<compile_context>
chip_gen: v5e
topology: v5e:2x2
jax: 0.10.0
libtpu: 0.0.40
codegen_flags: <defaults>
</compile_context>

<pallas_src>
import functools
import math

import jax
import jax.numpy as jnp
from jax.experimental import pallas as pl
from jax.experimental.pallas import tpu as pltpu


# ~2 MiB (f32) per input buffer => ~4 MiB double-buffered: fits the default
# scoped VMEM on every generation (v5e 16 MiB, v6e/v7x 32 MiB) with headroom.
_BLOCK_ELEMS = 512 * 1024
# round_up(K,128) above this switches to the K-tiled accumulator path.
_FULL_K_MAX_LANES = 4096


def _cdiv(a, b):
    return -(-a // b)


def _round_up(n, m):
    return _cdiv(n, m) * m


def _normalize_dims(dim, ndim):
    if isinstance(dim, int):
        dims = (dim,)
    else:
        dims = tuple(dim)
    return tuple(sorted({d % ndim for d in dims}))


def _choose_tm(m_padded, cap, sub):
    """Rows per block: <= ~cap, multiple of `sub`, and >= 2 tiles whenever
    possible so the parallel M grid axis can shard across 2 TCs (v7x)."""
    if m_padded <= sub:
        return m_padded
    n_tiles = max(2, _cdiv(m_padded, cap))
    return _round_up(_cdiv(m_padded, n_tiles), sub)


# ---------------------------------------------------------------------------
# Kernels
# ---------------------------------------------------------------------------
def _mean_full_k_kernel(x_ref, o_ref, *, inv_k):
    # x_ref: (TM, K) block in native dtype; one cross-lane reduce per tile.
    x = x_ref[...].astype(jnp.float32)
    o_ref[...] = (jnp.sum(x, axis=-1, keepdims=True) * inv_k).astype(o_ref.dtype)


def _mean_tiled_k_kernel(x_ref, o_ref, acc_ref, *, inv_k, tk):
    # Grid: (M tiles, K tiles); K is the innermost "arbitrary" axis.
    k = pl.program_id(1)

    @pl.when(k == 0)
    def _init():
        acc_ref[...] = jnp.zeros_like(acc_ref)

    x = x_ref[...].astype(jnp.float32)              # (TM, TK), f32 in-vreg
    # VPU adds over aligned 128-lane groups -> (TM, 128) partial sums.
    partial = x[:, 0:128]
    for g in range(1, tk // 128):
        partial = partial + x[:, g * 128:(g + 1) * 128]
    acc_ref[...] += partial

    @pl.when(k == pl.num_programs(1) - 1)
    def _finalize():
        # Single cross-lane (XLU) reduce + 1/K scale per output tile.
        o_ref[...] = (
            jnp.sum(acc_ref[...], axis=-1, keepdims=True) * inv_k
        ).astype(o_ref.dtype)


# ---------------------------------------------------------------------------
# Wrapper
# ---------------------------------------------------------------------------
def mean_dim(x, dim=-1, keepdim=True):
    """Pallas equivalent of torch.mean(x, dim=dim, keepdim=keepdim)."""
    x = jnp.asarray(x)
    if not jnp.issubdtype(x.dtype, jnp.floating):
        x = x.astype(jnp.float32)

    orig_shape = x.shape
    ndim = x.ndim
    red_dims = _normalize_dims(dim, ndim)
    kept_dims = tuple(d for d in range(ndim) if d not in red_dims)

    perm = kept_dims + red_dims
    if perm != tuple(range(ndim)):
        # TODO(synk): express non-trailing reductions with a multi-dim
        # BlockSpec over the original layout to avoid this extra HBM pass
        # (all configurations in the test suite reduce trailing dims, so this
        # branch is not taken there).
        x = jnp.transpose(x, perm)

    M = int(math.prod(orig_shape[d] for d in kept_dims)) if kept_dims else 1
    K = int(math.prod(orig_shape[d] for d in red_dims))
    x2 = x.reshape(M, K)

    itemsize = x.dtype.itemsize
    sub = max(8, 32 // itemsize)          # sublane multiple: f32->8, bf16->16
    lanes = _round_up(K, 128)
    m_padded = _round_up(M, sub)
    inv_k = 1.0 / K                        # Python float -> jaxpr literal
    cost = pl.CostEstimate(flops=M * K, transcendentals=0,
                           bytes_accessed=(M * K + M) * itemsize)

    if lanes <= _FULL_K_MAX_LANES:
        # ---------------- full-K path: grid over M only -------------------
        cap = max(sub, min(2048, (_BLOCK_ELEMS // lanes) // sub * sub))
        tm = _choose_tm(m_padded, cap, sub)
        mp = _round_up(m_padded, tm)
        if mp != M:
            # Zero rows; discarded after the call (pad <= tm-1 rows).
            x2 = jnp.pad(x2, ((0, mp - M), (0, 0)))

        kernel = functools.partial(_mean_full_k_kernel, inv_k=inv_k)
        out2 = pl.pallas_call(
            kernel,
            out_shape=jax.ShapeDtypeStruct((mp, 1), x.dtype),
            grid_spec=pltpu.PrefetchScalarGridSpec(
                num_scalar_prefetch=0,
                grid=(mp // tm,),
                in_specs=[pl.BlockSpec((tm, K), lambda i: (i, 0))],
                out_specs=pl.BlockSpec((tm, 1), lambda i: (i, 0)),
            ),
            compiler_params=pltpu.CompilerParams(
                dimension_semantics=("parallel",),
                vmem_limit_bytes=32 * 1024 * 1024,
            ),
            cost_estimate=cost,
        )(x2)
    else:
        # ------------- K-tiled path: (M, K) grid + f32 accumulator --------
        tm = _choose_tm(m_padded, 256, sub)
        mp = _round_up(m_padded, tm)

        tk_budget = min(8192, max(1024, (_BLOCK_ELEMS // tm) // 128 * 128))
        n_k = max(2, _cdiv(lanes, tk_budget))      # >=2 steps of pipeline depth
        tk = _round_up(_cdiv(lanes, n_k), 128)
        kp = tk * n_k

        if mp != M or kp != K:
            # Zero padding is neutral for the sum; divisor is the true K.
            x2 = jnp.pad(x2, ((0, mp - M), (0, kp - K)))

        kernel = functools.partial(_mean_tiled_k_kernel, inv_k=inv_k, tk=tk)
        out2 = pl.pallas_call(
            kernel,
            out_shape=jax.ShapeDtypeStruct((mp, 1), x.dtype),
            grid_spec=pltpu.PrefetchScalarGridSpec(
                num_scalar_prefetch=0,
                grid=(mp // tm, n_k),
                in_specs=[pl.BlockSpec((tm, tk), lambda i, k: (i, k))],
                out_specs=pl.BlockSpec((tm, 1), lambda i, k: (i, 0)),
                scratch_shapes=[pltpu.VMEM((tm, 128), jnp.float32)],
            ),
            compiler_params=pltpu.CompilerParams(
                dimension_semantics=("parallel", "arbitrary"),
                vmem_limit_bytes=32 * 1024 * 1024,
            ),
            cost_estimate=cost,
        )(x2)

    res = out2[:M, 0]

    if keepdim:
        out_shape = tuple(1 if d in red_dims else orig_shape[d]
                          for d in range(ndim))
    else:
        out_shape = tuple(orig_shape[d] for d in kept_dims)
    return res.reshape(out_shape)


if __name__ == "__main__":
    key = jax.random.PRNGKey(0)
    k1, k2 = jax.random.split(key)

    # Small NCHW tensors consistent with the module's test_data_suite layout.
    x_small = jax.random.normal(k1, (2, 8, 16, 16), dtype=jnp.float32)
    x_wide = jax.random.normal(k2, (1, 24, 16, 16), dtype=jnp.float32)

    cases = [
        (x_small, -1, True),                              # full-K, K=16
        (jnp.zeros((2, 8, 16, 16), jnp.float32), -1, True),
        (jnp.ones((2, 8, 16, 16), jnp.float32), (-1, 2), False),
        (x_small, (-1, 2), False),                        # full-K, K=256
        (x_small, (-1, -2, -3), False),                   # full-K, K=2048
        (x_wide, (-1, -2, -3), False),                    # K-tiled, K=6144
    ]

    for xin, dim, keepdim in cases:
        out = jax.block_until_ready(mean_dim(xin, dim=dim, keepdim=keepdim))
        ref = jnp.mean(xin, axis=dim, keepdims=keepdim)
        assert out.shape == ref.shape, (dim, keepdim, out.shape, ref.shape)
        assert out.dtype == ref.dtype, (dim, keepdim, out.dtype, ref.dtype)
        assert jnp.allclose(out, ref, atol=1e-5, rtol=1e-5), (dim, keepdim)

    print("KERNEL_OK")
</pallas_src>

<mosaic_0001>
module attributes {stable_mosaic.version = 11 : i64} {
  func.func @_mean_full_k_kernel(%arg0: i32, %arg1: memref<128x16xf32, #tpu.memory_space<vmem>>, %arg2: memref<128x1xf32, #tpu.memory_space<vmem>>) attributes {dimension_semantics = [#tpu.dimension_semantics<parallel>], iteration_bounds = array<i64: 2>, scalar_prefetch = 0 : i64, scratch_operands = 0 : i64, tpu.core_type = #tpu.core_type<tc>, window_params = [{transform_indices = @transform_0, window_bounds = array<i64: 128, 16>}, {transform_indices = @transform_1, window_bounds = array<i64: 128, 1>}]} {
    %c0 = arith.constant 0 : index
    %c0_0 = arith.constant 0 : index
    %0 = vector.load %arg1[%c0, %c0_0] : memref<128x16xf32, #tpu.memory_space<vmem>>, vector<128x16xf32>
    %cst = arith.constant dense<0.000000e+00> : vector<128xf32>
    %1 = vector.multi_reduction <add>, %0, %cst [1] : vector<128x16xf32> to vector<128xf32>
    %2 = vector.shape_cast %1 : vector<128xf32> to vector<128x1xf32>
    %cst_1 = arith.constant 6.250000e-02 : f32
    %3 = vector.broadcast %cst_1 : f32 to vector<128x1xf32>
    %4 = arith.mulf %2, %3 : vector<128x1xf32>
    %c0_2 = arith.constant 0 : index
    %c0_3 = arith.constant 0 : index
    %5 = vector.load %arg2[%c0_2, %c0_3] : memref<128x1xf32, #tpu.memory_space<vmem>>, vector<128x1xf32>
    tpu.vector_store %arg2[%c0_2, %c0_3], %4 {strides = array<i32>} : memref<128x1xf32, #tpu.memory_space<vmem>>, vector<128x1xf32>,
    return
  }
  func.func @transform_0(%arg0: i32) -> (i32, i32) {
    %c0_i32 = arith.constant 0 : i32
    %c0_i32_0 = arith.constant 0 : i32
    return %arg0, %c0_i32 : i32, i32
  }
  func.func @transform_1(%arg0: i32) -> (i32, i32) {
    %c0_i32 = arith.constant 0 : i32
    %c0_i32_0 = arith.constant 0 : i32
    return %arg0, %c0_i32 : i32, i32
  }
}

</mosaic_0001>

<bundles_post_ra>
// kernel: tpu_custom_call.1
= control target key start
LH: loop header
LB: loop body
LE: loop exit
PB: predicated region body
PF: predicated region fallthrough
CT: control target
= control target key end

     0   :  { %s311_s6 = smov 0   ;;  %s403_s0 = inlined_call_operand.vmem [shape: f32[256,16], index: 0, kind: input, shape index: {}]   ;;  %s404_s1 = inlined_call_operand.vmem [shape: f32[256,1], index: 1, kind: output, shape index: {}]  }
   0x1 LB: > { %s274_s7 = sadd.s32 4294967295, %s299_s6   ;;  %p278_p0 = scmp.ge.s32.totalorder %s299_s6, 1  ;;  %s299_s6 = sphi %s311_s6, %s11_s6  }
   0x2   : > { %p88_p1 = scmp.lt.s32.totalorder %s299_s6, 3 }
   0x4   : > { %p89_p2 = pnand %p278_p0, %p88_p1 }
   0x5   : > { %s279_s8 = sshll.u32 (!%p89_p2), %s274_s7, 4 }
   0x6   : > { %92 = sbr.rel (%p89_p2) target bundleno = 175 (0xaf), region = 24  ;;  %p109_p3 = scmp.lt.s32.totalorder (!%p89_p2), %s279_s8, 31 }
   0xb   : > { %s406_s8 = smov (!%p109_p3, %s279_s8), 31  ;;  %vm136_vm0 = vcmask 130048   ;;  %vm201_vm1 = vcmask 7168  }
   0xc   : > { %s280_s9 = sshll.u32 %s406_s8, 3 }
   0xd   : > { %s327_s12 = scalar_lea.vmem %s403_s0, %s280_s9  ;;  %s366_s15 = scalar_lea.vmem %s404_s1, %s280_s9 }
   0xe   : > { %v120_v0 = vld [vmem:[%s327_s12] sm:$0xff]  ;;  %v122_v2 = vld [vmem:[%s327_s12 + $0x10] sm:$0xff]  ;;  %v121_v6 = vld [vmem:[%s327_s12 + $0x8] sm:$0xff] }
   0xf   : > { %v124_v1 = vld [vmem:[%s327_s12 + $0x20] sm:$0xff]  ;;  %v137_v3 = vsel %vm136_vm0, %v120_v0, 0.0  ;;  %v143_v5 = vsel %vm136_vm0, %v122_v2, 0.0  ;;  %v125_v7 = vld [vmem:[%s327_s12 + $0x28] sm:$0xff]  ;;  %v123_v8 = vld [vmem:[%s327_s12 + $0x18] sm:$0xff]  ;;  %v140_v9 = vsel %vm136_vm0, %v121_v6, 0.0 }
  0x10   : > { %v149_v4 = vsel %vm136_vm0, %v124_v1, 0.0  ;;  %138 = vadd.xlane.f32.xlu0 %v137_v3  ;;  %144 = vadd.xlane.f32.xlu1 %v143_v5  ;;  %v152_v10 = vsel %vm136_vm0, %v125_v7, 0.0  ;;  %v146_v11 = vsel %vm136_vm0, %v123_v8, 0.0  ;;  %v126_v12 = vld [vmem:[%s327_s12 + $0x30] sm:$0xff]  ;;  %v128_v13 = vld [vmem:[%s327_s12 + $0x40] sm:$0xff]  ;;  %v127_v14 = vld [vmem:[%s327_s12 + $0x38] sm:$0xff] }
  0x11   : > { %150 = vadd.xlane.f32.xlu2 %v149_v4  ;;  %v155_v15 = vsel %vm136_vm0, %v126_v12, 0.0  ;;  %v161_v16 = vsel %vm136_vm0, %v128_v13, 0.0  ;;  %v158_v17 = vsel %vm136_vm0, %v127_v14, 0.0  ;;  %v129_v18 = vld [vmem:[%s327_s12 + $0x48] sm:$0xff]  ;;  %v131_v19 = vld [vmem:[%s327_s12 + $0x58] sm:$0xff]  ;;  %v130_v20 = vld [vmem:[%s327_s12 + $0x50] sm:$0xff] }
  0x12   : > { %v164_v21 = vsel %vm136_vm0, %v129_v18, 0.0  ;;  %v170_v22 = vsel %vm136_vm0, %v131_v19, 0.0  ;;  %v167_v23 = vsel %vm136_vm0, %v130_v20, 0.0  ;;  %v132_v24 = vld [vmem:[%s327_s12 + $0x60] sm:$0xff]  ;;  %v134_v25 = vld [vmem:[%s327_s12 + $0x70] sm:$0xff]  ;;  %v133_v26 = vld [vmem:[%s327_s12 + $0x68] sm:$0xff] }
  0x13   : > { %v173_v27 = vsel %vm136_vm0, %v132_v24, 0.0  ;;  %v179_v28 = vsel %vm136_vm0, %v134_v25, 0.0  ;;  %v176_v29 = vsel %vm136_vm0, %v133_v26, 0.0  ;;  %v135_v30 = vld [vmem:[%s327_s12 + $0x78] sm:$0xff] }
  0x14   : > { %v182_v31 = vsel %vm136_vm0, %v135_v30, 0.0 }
  0x18   : > { %141 = vadd.xlane.f32.xlu0 %v140_v9  ;;  %147 = vadd.xlane.f32.xlu1 %v146_v11 }
  0x19   : > { %153 = vadd.xlane.f32.xlu2 %v152_v10 }
  0x20   : > { %156 = vadd.xlane.f32.xlu0 %v155_v15  ;;  %159 = vadd.xlane.f32.xlu1 %v158_v17 }
  0x21   : > { %162 = vadd.xlane.f32.xlu2 %v161_v16 }
  0x28   : > { %165 = vadd.xlane.f32.xlu0 %v164_v21  ;;  %168 = vadd.xlane.f32.xlu1 %v167_v23 }
  0x29   : > { %171 = vadd.xlane.f32.xlu2 %v170_v22 }
  0x30   : > { %174 = vadd.xlane.f32.xlu0 %v173_v27  ;;  %177 = vadd.xlane.f32.xlu1 %v176_v29 }
  0x31   : > { %180 = vadd.xlane.f32.xlu2 %v179_v28 }
  0x38   : > { %183 = vadd.xlane.f32.xlu0 %v182_v31 }
  0x83   : > { %v139_v32 = vpop.xlane.xlu0 %138  ;;  %v145_v36 = vpop.xlane.xlu1 %144 }
  0x84   : > { %v151_v33 = vpop.xlane.xlu2 %150  ;;  %v185_v34 = vmul.f32 0.0625, %v139_v32  ;;  %v187_v37 = vmul.f32 0.0625, %v145_v36 }
  0x85   : > { %v189_v35 = vmul.f32 0.0625, %v151_v33 }
  0x86   : > { %202 = vst.msk [vmem:[%s366_s15] sm:$0xff] %vm201_vm1, %v185_v34 }
  0x87   : > { %206 = vst.msk [vmem:[%s366_s15 + $0x20] sm:$0xff] %vm201_vm1, %v189_v35 }
  0x88   : > { %204 = vst.msk [vmem:[%s366_s15 + $0x10] sm:$0xff] %vm201_vm1, %v187_v37 }
  0x8b   : > { %v142_v38 = vpop.xlane.xlu0 %141  ;;  %v148_v42 = vpop.xlane.xlu1 %147 }
  0x8c   : > { %v154_v39 = vpop.xlane.xlu2 %153  ;;  %v186_v40 = vmul.f32 0.0625, %v142_v38  ;;  %v188_v43 = vmul.f32 0.0625, %v148_v42 }
  0x8d   : > { %v190_v41 = vmul.f32 0.0625, %v154_v39 }
  0x8e   : > { %203 = vst.msk [vmem:[%s366_s15 + $0x8] sm:$0xff] %vm201_vm1, %v186_v40 }
  0x8f   : > { %207 = vst.msk [vmem:[%s366_s15 + $0x28] sm:$0xff] %vm201_vm1, %v190_v41 }
  0x90   : > { %205 = vst.msk [vmem:[%s366_s15 + $0x18] sm:$0xff] %vm201_vm1, %v188_v43 }
  0x93   : > { %v157_v44 = vpop.xlane.xlu0 %156  ;;  %v160_v48 = vpop.xlane.xlu1 %159 }
  0x94   : > { %v163_v45 = vpop.xlane.xlu2 %162  ;;  %v191_v46 = vmul.f32 0.0625, %v157_v44  ;;  %v192_v49 = vmul.f32 0.0625, %v160_v48 }
  0x95   : > { %v193_v47 = vmul.f32 0.0625, %v163_v45 }
  0x96   : > { %208 = vst.msk [vmem:[%s366_s15 + $0x30] sm:$0xff] %vm201_vm1, %v191_v46 }
  0x97   : > { %210 = vst.msk [vmem:[%s366_s15 + $0x40] sm:$0xff] %vm201_vm1, %v193_v47 }
  0x98   : > { %209 = vst.msk [vmem:[%s366_s15 + $0x38] sm:$0xff] %vm201_vm1, %v192_v49 }
  0x9b   : > { %v166_v50 = vpop.xlane.xlu0 %165  ;;  %v169_v54 = vpop.xlane.xlu1 %168 }
  0x9c   : > { %v172_v51 = vpop.xlane.xlu2 %171  ;;  %v194_v52 = vmul.f32 0.0625, %v166_v50  ;;  %v195_v55 = vmul.f32 0.0625, %v169_v54 }
  0x9d   : > { %v196_v53 = vmul.f32 0.0625, %v172_v51 }
  0x9e   : > { %211 = vst.msk [vmem:[%s366_s15 + $0x48] sm:$0xff] %vm201_vm1, %v194_v52 }
  0x9f   : > { %213 = vst.msk [vmem:[%s366_s15 + $0x58] sm:$0xff] %vm201_vm1, %v196_v53 }
  0xa0   : > { %212 = vst.msk [vmem:[%s366_s15 + $0x50] sm:$0xff] %vm201_vm1, %v195_v55 }
  0xa3   : > { %v175_v56 = vpop.xlane.xlu0 %174  ;;  %v178_v60 = vpop.xlane.xlu1 %177 }
  0xa4   : > { %v181_v57 = vpop.xlane.xlu2 %180  ;;  %v197_v58 = vmul.f32 0.0625, %v175_v56  ;;  %v198_v61 = vmul.f32 0.0625, %v178_v60 }
  0xa5   : > { %v199_v59 = vmul.f32 0.0625, %v181_v57 }
  0xa6   : > { %214 = vst.msk [vmem:[%s366_s15 + $0x60] sm:$0xff] %vm201_vm1, %v197_v58 }
  0xa7   : > { %216 = vst.msk [vmem:[%s366_s15 + $0x70] sm:$0xff] %vm201_vm1, %v199_v59 }
  0xa8   : > { %215 = vst.msk [vmem:[%s366_s15 + $0x68] sm:$0xff] %vm201_vm1, %v198_v61 }
  0xab   : > { %v184_v62 = vpop.xlane.xlu0 %183 }
  0xac   : > { %v200_v63 = vmul.f32 0.0625, %v184_v62 }
  0xae   : > { %217 = vst.msk [vmem:[%s366_s15 + $0x78] sm:$0xff] %vm201_vm1, %v200_v63 }
  0xaf PF: > { %s11_s6 = sadd.s32 1, %s299_s6  }
  0xb0   : > { %p8_p4 = scmp.ge.s32.totalorder %s11_s6, 4  }
  0xb2   :  { %10 = sbr.rel (!%p8_p4) target bundleno = 1 (0x1), region = 54 }

</bundles_post_ra>
